<compile_context>
chip_gen: v6e
topology: v6e:2x2x1
jax: 0.10.0
libtpu: 0.0.40
codegen_flags: <defaults>
</compile_context>

<pallas_src>
import functools

import jax
import jax.numpy as jnp
from jax.experimental import pallas as pl
from jax.experimental.pallas import tpu as pltpu

_COL_CANDIDATES = (8192, 4096, 2048, 1024, 512, 256, 128)
_TARGET_BLOCK_BYTES = 4 * 1024 * 1024   # per block, per array (input and output)
_LANES = 128
_SUBLANES = 8


def _cdiv(a, b):
    return -(-a // b)


def _generalized_relu_kernel(x_ref, o_ref, *, threshold, alpha, max_value):
    x = x_ref[...]
    if threshold == 0.0 and alpha == 0.0:
        # Plain ReLU fast path: one VALU op per vreg.
        y = jnp.maximum(x, jnp.asarray(0, dtype=x.dtype))
    else:
        thr = jnp.asarray(threshold, dtype=x.dtype)
        al = jnp.asarray(alpha, dtype=x.dtype)
        y = jnp.where(x >= thr, x, al * (x - thr))
    if max_value is not None:
        y = jnp.minimum(y, jnp.asarray(max_value, dtype=x.dtype))
    o_ref[...] = y


def _pick_block_units(total_units, max_units_per_block):
    """Block size in minimal-tile units.

    Fits the per-block byte budget and, whenever the tensor spans more than one
    unit, guarantees an even number (>= 2, ideally 4) of grid steps so both
    v7x TensorCores get balanced work and the DMA pipeline has steps to overlap.
    """
    if total_units <= 1:
        return 1
    block = max(1, min(max_units_per_block, total_units))
    steps = _cdiv(total_units, block)
    if steps < 4:
        for desired in (4, 2):
            if desired > total_units:
                continue
            cand = _cdiv(total_units, desired)
            if _cdiv(total_units, cand) % 2 == 0:
                return min(block, cand)
    return block


def _compiler_params(block_bytes):
    # Double-buffered (in + out) footprint plus headroom for internal scratch.
    vmem = 2 * 2 * block_bytes + (4 << 20)
    vmem = min(48 << 20, max(16 << 20, vmem))
    return pltpu.CompilerParams(
        dimension_semantics=("parallel",),
        vmem_limit_bytes=vmem,
    )


def generalized_relu(x, max_value=None, threshold=0.0, alpha=0.0):
    """Elementwise GeneralizedReLU (torch semantics) via a Pallas TPU kernel.

      y = where(x >= threshold, x, alpha * (x - threshold))
      if max_value is not None: y = min(y, max_value)
    """
    orig_shape = x.shape
    if not jnp.issubdtype(x.dtype, jnp.floating):
        # torch promotes integer tensors against float threshold/alpha.
        x = x.astype(jnp.float32)
    dtype = x.dtype
    n = x.size
    if n == 0:
        return x.reshape(orig_shape)

    itemsize = jnp.dtype(dtype).itemsize
    packing = max(1, 4 // itemsize)                   # 1 f32, 2 bf16, 4 int8
    sublane_mult = _SUBLANES * packing
    max_block_elems = max(1, _TARGET_BLOCK_BYTES // itemsize)

    kernel = functools.partial(
        _generalized_relu_kernel,
        threshold=threshold, alpha=alpha, max_value=max_value,
    )

    cols = next((c for c in _COL_CANDIDATES if n % c == 0), None)
    if cols is not None:
        # Pad-free lane-dense 2-D slab.  A partial tail row-block (rows not a
        # multiple of block_rows) is masked by Pallas automatically.
        rows = n // cols
        x_nd = x.reshape(rows, cols)
        row_units = _cdiv(rows, sublane_mult)
        max_units = max(1, (max_block_elems // cols) // sublane_mult)
        block_units = _pick_block_units(row_units, max_units)
        block_rows = min(rows, block_units * sublane_mult)
        block_shape = (block_rows, cols)
        grid = (_cdiv(rows, block_rows),)
        index_map = lambda i: (i, 0)
        out_shape = jax.ShapeDtypeStruct((rows, cols), dtype)
        block_bytes = block_rows * cols * itemsize
    else:
        # Ragged size: flat 1-D pipeline.  The final partial block is masked by
        # Pallas (no jnp.pad / trailing-slice HBM round-trips).
        x_nd = x.reshape(n)
        unit = _SUBLANES * _LANES * packing           # one vreg worth of elems
        total_units = _cdiv(n, unit)
        max_units = max(1, max_block_elems // unit)
        block_units = _pick_block_units(total_units, max_units)
        block_elems = min(n, block_units * unit)
        block_shape = (block_elems,)
        grid = (_cdiv(n, block_elems),)
        index_map = lambda i: (i,)
        out_shape = jax.ShapeDtypeStruct((n,), dtype)
        block_bytes = block_elems * itemsize

    out = pl.pallas_call(
        kernel,
        out_shape=out_shape,
        grid=grid,
        in_specs=[pl.BlockSpec(block_shape, index_map)],
        out_specs=pl.BlockSpec(block_shape, index_map),
        compiler_params=_compiler_params(block_bytes),
    )(x_nd)
    return out.reshape(orig_shape)


def _reference(x, max_value=None, threshold=0.0, alpha=0.0):
    y = jnp.where(x >= threshold, x, alpha * (x - threshold))
    if max_value is not None:
        y = jnp.minimum(y, max_value)
    return y


if __name__ == "__main__":
    key = jax.random.PRNGKey(0)
    x = jax.random.normal(key, (2, 4, 16, 16), dtype=jnp.float32)

    # Non-default params so every branch of the op is exercised.
    max_value, threshold, alpha = 0.5, 0.1, 0.2
    out = jax.block_until_ready(
        generalized_relu(x, max_value=max_value, threshold=threshold, alpha=alpha))
    ref = _reference(x, max_value=max_value, threshold=threshold, alpha=alpha)
    assert out.shape == x.shape and out.dtype == x.dtype
    assert jnp.allclose(out, ref, atol=1e-6, rtol=1e-6)

    # Default-parameter path (plain ReLU fast path, no clamp).
    out2 = jax.block_until_ready(generalized_relu(x))
    assert jnp.allclose(out2, _reference(x), atol=1e-6, rtol=1e-6)

    # Multi-step grid: several row blocks -> both v7x TensorCores + pipelined DMA.
    xm = jax.random.normal(jax.random.PRNGKey(2), (256, 1024), dtype=jnp.float32)
    out3 = jax.block_until_ready(
        generalized_relu(xm, max_value=0.9, threshold=-0.1, alpha=0.05))
    assert jnp.allclose(out3, _reference(xm, 0.9, -0.1, 0.05), atol=1e-6, rtol=1e-6)

    # Ragged sizes: 1-D masked-tail path (no pad / slice round-trips).
    xr = jax.random.normal(jax.random.PRNGKey(1), (3, 5, 7), dtype=jnp.float32)
    out4 = jax.block_until_ready(
        generalized_relu(xr, max_value=1.0, threshold=-0.2, alpha=0.3))
    assert out4.shape == xr.shape
    assert jnp.allclose(out4, _reference(xr, 1.0, -0.2, 0.3), atol=1e-6, rtol=1e-6)

    xr2 = jax.random.normal(jax.random.PRNGKey(3), (5000,), dtype=jnp.float32)
    out5 = jax.block_until_ready(
        generalized_relu(xr2, max_value=2.0, threshold=0.05, alpha=0.1))
    assert jnp.allclose(out5, _reference(xr2, 2.0, 0.05, 0.1), atol=1e-6, rtol=1e-6)

    # bf16 (sublane-packing path).
    xb = jax.random.normal(jax.random.PRNGKey(4), (8, 16, 32), dtype=jnp.bfloat16)
    out6 = jax.block_until_ready(
        generalized_relu(xb, max_value=0.7, threshold=0.1, alpha=0.2))
    refb = _reference(xb, 0.7, 0.1, 0.2)
    assert out6.dtype == jnp.bfloat16
    assert jnp.allclose(out6.astype(jnp.float32), refb.astype(jnp.float32), atol=1e-2)

    print("KERNEL_OK")
</pallas_src>

<mosaic_0001>
module attributes {stable_mosaic.version = 11 : i64} {
  func.func @_generalized_relu_kernel(%arg0: i32, %arg1: memref<1x2048xf32, #tpu.memory_space<vmem>>, %arg2: memref<1x2048xf32, #tpu.memory_space<vmem>>) attributes {dimension_semantics = [#tpu.dimension_semantics<parallel>], iteration_bounds = array<i64: 1>, scalar_prefetch = 0 : i64, scratch_operands = 0 : i64, tpu.core_type = #tpu.core_type<tc>, window_params = [{transform_indices = @transform_0, window_bounds = array<i64: 1, 2048>}, {transform_indices = @transform_1, window_bounds = array<i64: 1, 2048>}]} {
    %c0 = arith.constant 0 : index
    %c0_0 = arith.constant 0 : index
    %0 = vector.load %arg1[%c0, %c0_0] : memref<1x2048xf32, #tpu.memory_space<vmem>>, vector<1x2048xf32>
    %cst = arith.constant 1.000000e-01 : f32
    %1 = vector.broadcast %cst : f32 to vector<1x2048xf32>
    %2 = arith.cmpf oge, %0, %1 : vector<1x2048xf32>
    %cst_1 = arith.constant 1.000000e-01 : f32
    %3 = vector.broadcast %cst_1 : f32 to vector<1x2048xf32>
    %4 = arith.subf %0, %3 : vector<1x2048xf32>
    %cst_2 = arith.constant 2.000000e-01 : f32
    %5 = vector.broadcast %cst_2 : f32 to vector<1x2048xf32>
    %6 = arith.mulf %5, %4 : vector<1x2048xf32>
    %7 = arith.select %2, %0, %6 : vector<1x2048xi1>, vector<1x2048xf32>
    %cst_3 = arith.constant 5.000000e-01 : f32
    %8 = vector.broadcast %cst_3 : f32 to vector<1x2048xf32>
    %9 = arith.minimumf %7, %8 : vector<1x2048xf32>
    %c0_4 = arith.constant 0 : index
    %c0_5 = arith.constant 0 : index
    %10 = vector.load %arg2[%c0_4, %c0_5] : memref<1x2048xf32, #tpu.memory_space<vmem>>, vector<1x2048xf32>
    tpu.vector_store %arg2[%c0_4, %c0_5], %9 {strides = array<i32>} : memref<1x2048xf32, #tpu.memory_space<vmem>>, vector<1x2048xf32>,
    return
  }
  func.func @transform_0(%arg0: i32) -> (i32, i32) {
    %c0_i32 = arith.constant 0 : i32
    %c0_i32_0 = arith.constant 0 : i32
    return %arg0, %c0_i32 : i32, i32
  }
  func.func @transform_1(%arg0: i32) -> (i32, i32) {
    %c0_i32 = arith.constant 0 : i32
    %c0_i32_0 = arith.constant 0 : i32
    return %arg0, %c0_i32 : i32, i32
  }
}

</mosaic_0001>

<bundles_post_ra>
// kernel: tpu_custom_call.1
= control target key start
LH: loop header
LB: loop body
LE: loop exit
PB: predicated region body
PF: predicated region fallthrough
CT: control target
= control target key end

     0   :  { %6 = vsyncpa [#allocation3], 0  ;;  %s116_s0 = inlined_call_operand.hbm [shape: f32[1,2048], index: 0, kind: input, shape index: {}]   ;;  %s117_s1 = inlined_call_operand.hbm [shape: f32[1,2048], index: 1, kind: output, shape index: {}]  }
   0x1   :  { %7 = vsyncpa [#allocation4], 0  ;;  %s98_s6 = smov [#allocation2]  }
   0x2   :  { %s14_s7 = sshll.u32 %s98_s6, 4  ;;  %s15_s7 = int_to_ptr.vmem [resolvable:$true] %s14_s7 }
   0x3   :  { %s62_s8 = scalar_lea.vmem %s15_s7, 256  ;;  %p67_p1 = scmp.lt.s32.totalorder %s15_s7, %s15_s7 }
   0x4   :  { %p63_p0 = scmp.ne.s32.totalorder %s15_s7, %s62_s8  ;;  %p68_p2 = scmp.lt.s32.totalorder %s62_s8, %s62_s8 }
   0x6   :  { %p69_p3 = por %p68_p2, %p67_p1 }
   0x8   :  { %p70_p4 = pnand %p69_p3, %p63_p0 }
   0xa   :  { %73 = shalt.err (!%p70_p4)
}
   0xb   :  { %17 = dma.hbm_to_vmem [thread:$0]  %s116_s0, 256, %s15_s7, [#allocation3]  }
   0xc   :  { %94 = dma.done.wait [#allocation3], 256  }
   0xd   :  { %95 = vsyncadd [#allocation3], 4294967040  ;;  %v21_v0 = vld [vmem:[#allocation2] sm:$0xff]  ;;  %v22_v1 = vld [vmem:[#allocation2 + $0x8] sm:$0xff]  ;;  %s99_s11 = smov [#allocation5]  }
   0xe   :  { %v50_v2 = vadd.f32 -0.1, %v21_v0  ;;  %vm23_vm0 = vcmp.ge.f32.partialorder %v21_v0, 0.1  ;;  %v51_v3 = vadd.f32 -0.1, %v22_v1 }
   0xf   :  { %vm24_vm1 = vcmp.ge.f32.partialorder %v22_v1, 0.1  ;;  %s41_s12 = sshll.u32 %s99_s11, 4  ;;  %s42_s12 = int_to_ptr.vmem [resolvable:$true] %s41_s12 }
  0x10   :  { %v27_v4 = vmul.f32 0.2, %v50_v2  ;;  %v28_v5 = vmul.f32 0.2, %v51_v3  ;;  %s74_s0 = scalar_lea.vmem %s42_s12, 256  ;;  %p79_p6 = scmp.lt.s32.totalorder %s42_s12, %s42_s12 }
  0x11   :  { %p75_p5 = scmp.ne.s32.totalorder %s42_s12, %s74_s0  ;;  %p80_p7 = scmp.lt.s32.totalorder %s74_s0, %s74_s0 }
  0x12   :  { %v29_v6 = vsel %vm23_vm0, %v21_v0, %v27_v4  ;;  %v30_v8 = vsel %vm24_vm1, %v22_v1, %v28_v5 }
  0x13   :  { %v31_v7 = vmin.f32 %v29_v6, 0.5  ;;  %v32_v9 = vmin.f32 %v30_v8, 0.5  ;;  %p81_p8 = por %p80_p7, %p79_p6 }
  0x15   :  { %33 = vst [vmem:[#allocation5] sm:$0xff] %v31_v7  ;;  %34 = vst [vmem:[#allocation5 + $0x8] sm:$0xff] %v32_v9  ;;  %p82_p9 = pnand %p81_p8, %p75_p5 }
  0x17   :  { %85 = shalt.err (!%p82_p9)
}
  0x18   :  { %44 = dma.vmem_to_hbm [thread:$0]  %s42_s12, 256, %s117_s1, [#allocation4]  }
  0x19   :  { %96 = dma.done.wait [#allocation4], 256  }
  0x1a   :  { %97 = vsyncadd [#allocation4], 4294967040 }
  0x1b   :  { %48 = vsyncpa [#allocation3], 1 }
  0x1c   :  { %49 = vsyncpa [#allocation4], 1 }

</bundles_post_ra>
